<compile_context>
chip_gen: v5e
topology: v5e:2x2
jax: 0.10.0
libtpu: 0.0.40
codegen_flags: <defaults>
</compile_context>

<pallas_src>
import functools

import jax
import jax.numpy as jnp
from jax import lax
from jax.experimental import pallas as pl
from jax.experimental.pallas import tpu as pltpu


_LANE_CHUNK = 512        # lane-chunk width for in-kernel accumulation (multiple of 128)
_ROW_STRIP = 8           # sublane strip height (one f32 vreg row group)
_MAX_TM = 1024           # cap on row tile; strip loop bounds vreg pressure so this can be large
_BF16_SUBTRACT = False   # optional: subtract in bf16 before upcasting (v7x VALU relief); gated off
# TODO(synk): on v7x, verify with xprof that the leading "parallel" axis actually shards across
# both TensorCores; if one TC idles, flip this to use pltpu.CORE_PARALLEL.
_USE_CORE_PARALLEL = False


def _round_up(x, m):
    return (x + m - 1) // m * m


def _tpu_generation_config():
    """Per-generation knobs: (num_core_blocks, per-input tile bytes, scoped VMEM limit)."""
    num_tc = 1
    vmem_bytes = 128 * 1024 * 1024
    try:
        info = pltpu.get_tpu_info()
        try:
            vb = int(getattr(info, "vmem_capacity_bytes"))
            if vb > 0:
                vmem_bytes = vb
        except Exception:
            pass
        for attr in ("num_tensorcores", "tensorcore_count", "tensorcores_per_chip",
                     "num_cores_per_chip", "cores_per_chip", "num_cores", "core_count"):
            try:
                v = int(getattr(info, attr))
                if v >= 1:
                    num_tc = v
                    break
            except Exception:
                continue
    except Exception:
        pass

    if vmem_bytes >= 100 * 1024 * 1024:
        # v5e / v6e: 128 MiB VMEM -> bigger tiles, larger scoped limit.
        tile_bytes, vmem_limit = 8 * 1024 * 1024, 64 * 1024 * 1024
    else:
        # v7x: 64 MiB VMEM per TC -> stay conservative.
        tile_bytes, vmem_limit = 4 * 1024 * 1024, 40 * 1024 * 1024

    # Only split the leading grid axis on chips with >1 TensorCore; on 1-TC chips the
    # split is pure overhead (duplicated clamped tail block, doubled init/finalize).
    num_core_blocks = 2 if num_tc >= 2 else 1
    return num_core_blocks, tile_bytes, vmem_limit


def _joints_mse_kernel(*refs, tm, hw, rows, n_steps, scale,
                       weighted, needs_mask, bf16_sub):
    if weighted:
        pred_ref, gt_ref, w_ref, out_ref, acc_ref = refs
    else:
        pred_ref, gt_ref, out_ref, acc_ref = refs
        w_ref = None

    c = pl.program_id(0)     # core-block index (parallel)
    s = pl.program_id(1)     # reduction step (arbitrary)

    @pl.when(s == 0)
    def _init():
        acc_ref[...] = jnp.zeros_like(acc_ref)

    # Global row offset of this tile (UNclamped; used for the ragged-row predicate
    # and for slicing the resident weight vector).
    row_base = (c * n_steps + s) * tm

    n_strips = tm // _ROW_STRIP
    n_chunks = -(-hw // _LANE_CHUNK)

    for ci in range(n_chunks):
        lo = ci * _LANE_CHUNK
        width = min(_LANE_CHUNK, hw - lo)
        lane = pl.ds(lo, width)

        def strip_body(r, part, _lane=lane, _width=width):
            r0 = pl.multiple_of(r * _ROW_STRIP, _ROW_STRIP)
            if bf16_sub:
                # bf16 subtract (native bf16 VPU), upcast only the diff.
                d = (pred_ref[pl.ds(r0, _ROW_STRIP), _lane]
                     - gt_ref[pl.ds(r0, _ROW_STRIP), _lane]).astype(jnp.float32)
            else:
                p = pred_ref[pl.ds(r0, _ROW_STRIP), _lane].astype(jnp.float32)
                g = gt_ref[pl.ds(r0, _ROW_STRIP), _lane].astype(jnp.float32)
                d = p - g
            if weighted:
                wrow = pl.multiple_of(row_base + r0, _ROW_STRIP)
                w = w_ref[pl.ds(wrow, _ROW_STRIP), :]            # (8, 1) f32 broadcast
                d = d * w
            sq = d * d
            if needs_mask:
                # (8, 1) column predicate; kept as a SELECT so OOB garbage (NaN/Inf)
                # from the padded/duplicated tail block cannot propagate.
                rid = row_base + r0 + lax.broadcasted_iota(jnp.int32, (_ROW_STRIP, 1), 0)
                sq = jnp.where(rid < rows, sq, 0.0)
            return part + sq

        part0 = jnp.zeros((_ROW_STRIP, width), jnp.float32)
        part = lax.fori_loop(0, n_strips, strip_body, part0,
                             unroll=(True if n_strips <= 4 else 4))
        acc_ref[:, lane] += part

    @pl.when(s == n_steps - 1)
    def _finalize():
        # One cross-lane reduce (XLU slot) per core; scale applied to 8 scalars.
        out_ref[...] = jnp.sum(acc_ref[...], axis=-1, keepdims=True) * scale


def joints_mse_loss(output, target, target_weight=None, loss_weight=1.0):
    """output, target: (B, K, H, W) heatmaps (any float dtype). target_weight: (B, K) or None."""
    B, K, H, W = output.shape
    HW = H * W
    R = B * K

    num_core_blocks, tile_bytes, vmem_limit = _tpu_generation_config()

    pred = output.reshape(R, HW)
    gt = target.reshape(R, HW)
    weighted = target_weight is not None

    # Tiny-input safeguard: keep at least 8 sublane rows (only for tiny B*K).
    rows = R
    if rows < 8:
        pad = 8 - rows
        pred = jnp.pad(pred, ((0, pad), (0, 0)))
        gt = jnp.pad(gt, ((0, pad), (0, 0)))
        rows = 8

    # Row-tile size: biggest tile that keeps 2 inputs x 2 buffers in the per-generation
    # VMEM budget; capped by one core's share of rows.
    itemsize = max(jnp.dtype(pred.dtype).itemsize, jnp.dtype(gt.dtype).itemsize)
    bytes_per_row = HW * itemsize
    tm = (tile_bytes // max(bytes_per_row, 1)) // 8 * 8
    tm = int(max(8, min(tm, _MAX_TM)))
    per_core_rows = _round_up(-(-rows // num_core_blocks), 8)
    tm = int(min(tm, max(8, per_core_rows)))

    n_blocks = -(-rows // tm)                             # total row blocks
    n_steps = -(-n_blocks // num_core_blocks)             # reduction steps per core block
    padded_rows = num_core_blocks * n_steps * tm
    needs_mask = padded_rows != rows

    if weighted:
        w = target_weight.reshape(R, 1).astype(jnp.float32)
        if padded_rows > R:
            w = jnp.pad(w, ((0, padded_rows - R), (0, 0)))

    def row_map(c, s):
        blk = c * n_steps + s
        if needs_mask:
            blk = jnp.minimum(blk, n_blocks - 1)          # clamp duplicate tail blocks (masked in-kernel)
        return (blk, 0)

    # nn.MSELoss mean over (B, HW) per joint, then /K  => loss_weight / (B*K*H*W).
    scale = float(loss_weight) / float(R * HW)

    bf16_sub = bool(_BF16_SUBTRACT
                    and pred.dtype == jnp.bfloat16 and gt.dtype == jnp.bfloat16)

    kernel = functools.partial(
        _joints_mse_kernel,
        tm=tm, hw=HW, rows=rows, n_steps=n_steps, scale=scale,
        weighted=weighted, needs_mask=needs_mask, bf16_sub=bf16_sub)

    in_specs = [
        pl.BlockSpec((tm, HW), row_map),
        pl.BlockSpec((tm, HW), row_map),
    ]
    args = [pred, gt]
    if weighted:
        # Resident full block: one DMA for the whole (padded) weight vector; strips
        # are sliced with pl.ds inside the kernel.
        in_specs.append(pl.BlockSpec((padded_rows, 1), lambda c, s: (0, 0)))
        args.append(w)

    flops = int((5 if weighted else 4) * rows * HW)
    bytes_accessed = int(2 * rows * HW * itemsize
                         + (padded_rows * 4 if weighted else 0)
                         + num_core_blocks * 8 * 4)

    lead_sem = (pltpu.CORE_PARALLEL
                if (_USE_CORE_PARALLEL and num_core_blocks > 1) else "parallel")

    partials = pl.pallas_call(
        kernel,
        out_shape=jax.ShapeDtypeStruct((num_core_blocks, 8, 1), jnp.float32),
        grid_spec=pltpu.PrefetchScalarGridSpec(
            num_scalar_prefetch=0,
            grid=(num_core_blocks, n_steps),
            in_specs=in_specs,
            out_specs=pl.BlockSpec((pl.Squeezed(), 8, 1), lambda c, s: (c, 0, 0)),
            scratch_shapes=[pltpu.VMEM((8, HW), jnp.float32)],
        ),
        compiler_params=pltpu.CompilerParams(
            dimension_semantics=(lead_sem, "arbitrary"),
            vmem_limit_bytes=vmem_limit,
        ),
        cost_estimate=pl.CostEstimate(
            flops=flops, transcendentals=0, bytes_accessed=bytes_accessed),
    )(*args)

    # Tiny final sum over <= num_core_blocks*8 already-scaled scalars.
    return jnp.sum(partials)


def _reference_loss(output, target, target_weight=None, loss_weight=1.0):
    B, K = output.shape[:2]
    pred = output.reshape(B, K, -1).astype(jnp.float32)
    gt = target.reshape(B, K, -1).astype(jnp.float32)
    loss = 0.0
    for k in range(K):
        p, g = pred[:, k], gt[:, k]
        if target_weight is not None:
            wk = target_weight[:, k][:, None].astype(jnp.float32)
            p, g = p * wk, g * wk
        loss += jnp.mean((p - g) ** 2)
    return loss / K * loss_weight


if __name__ == "__main__":
    key = jax.random.PRNGKey(0)
    k1, k2, k3 = jax.random.split(key, 3)

    B, K, H, W = 2, 4, 16, 16
    output = jax.random.normal(k1, (B, K, H, W), jnp.float32)
    target = jax.random.normal(k2, (B, K, H, W), jnp.float32)
    target_weight = jax.random.uniform(k3, (B, K), jnp.float32)
    loss_weight = 1.0

    # Weighted path (f32 inputs).
    loss_w = joints_mse_loss(output, target, target_weight, loss_weight)
    jax.block_until_ready(loss_w)
    ref_w = _reference_loss(output, target, target_weight, loss_weight)
    assert jnp.allclose(loss_w, ref_w, rtol=1e-5, atol=1e-6), (loss_w, ref_w)

    # Unweighted path (specialized kernel without the weight input).
    loss_u = joints_mse_loss(output, target, None, loss_weight)
    jax.block_until_ready(loss_u)
    ref_u = _reference_loss(output, target, None, loss_weight)
    assert jnp.allclose(loss_u, ref_u, rtol=1e-5, atol=1e-6), (loss_u, ref_u)

    # bf16 inputs: DMA'd at bf16 width, upcast to f32 inside the kernel.
    out_bf = output.astype(jnp.bfloat16)
    tgt_bf = target.astype(jnp.bfloat16)
    loss_bf = joints_mse_loss(out_bf, tgt_bf, target_weight, loss_weight)
    jax.block_until_ready(loss_bf)
    ref_bf = _reference_loss(out_bf, tgt_bf, target_weight, loss_weight)
    assert jnp.allclose(loss_bf, ref_bf, rtol=1e-3, atol=1e-5), (loss_bf, ref_bf)

    print("KERNEL_OK")
</pallas_src>

<mosaic_0001>
module attributes {stable_mosaic.version = 11 : i64} {
  func.func @_joints_mse_kernel(%arg0: i32, %arg1: i32, %arg2: memref<8x256xf32, #tpu.memory_space<vmem>>, %arg3: memref<8x256xf32, #tpu.memory_space<vmem>>, %arg4: memref<8x1xf32, #tpu.memory_space<vmem>>, %arg5: memref<1x8x1xf32, #tpu.memory_space<vmem>>, %arg6: memref<8x256xf32, #tpu.memory_space<vmem>>) attributes {dimension_semantics = [#tpu.dimension_semantics<parallel>, #tpu.dimension_semantics<arbitrary>], iteration_bounds = array<i64: 1, 1>, scalar_prefetch = 0 : i64, scratch_operands = 1 : i64, tpu.core_type = #tpu.core_type<tc>, window_params = [{transform_indices = @transform_0, window_bounds = array<i64: 8, 256>}, {transform_indices = @transform_1, window_bounds = array<i64: 8, 256>}, {pipeline_mode = #tpu.pipeline_mode<synchronous>, transform_indices = @transform_2, window_bounds = array<i64: 8, 1>}, {transform_indices = @transform_3, window_bounds = array<i64: 1, 8, 1>}]} {
    %c0_i32 = arith.constant 0 : i32
    %0 = arith.cmpi eq, %arg1, %c0_i32 : i32
    %1 = arith.extui %0 : i1 to i32
    %c0_i32_0 = arith.constant 0 : i32
    %2 = arith.cmpi ne, %1, %c0_i32_0 : i32
    scf.if %2 {
      %cst_12 = arith.constant 0.000000e+00 : f32
      %28 = vector.broadcast %cst_12 : f32 to vector<8x256xf32>
      %c0_13 = arith.constant 0 : index
      %c0_14 = arith.constant 0 : index
      %29 = vector.load %arg6[%c0_13, %c0_14] : memref<8x256xf32, #tpu.memory_space<vmem>>, vector<8x256xf32>
      tpu.vector_store %arg6[%c0_13, %c0_14], %28 {strides = array<i32>} : memref<8x256xf32, #tpu.memory_space<vmem>>, vector<8x256xf32>,
    } else {
    }
    %c1_i32 = arith.constant 1 : i32
    %3 = arith.muli %arg0, %c1_i32 : i32
    %4 = arith.addi %3, %arg1 : i32
    %c8_i32 = arith.constant 8 : i32
    %5 = arith.muli %4, %c8_i32 : i32
    %cst = arith.constant 0.000000e+00 : f32
    %6 = vector.broadcast %cst : f32 to vector<8x256xf32>
    %c0_i32_1 = arith.constant 0 : i32
    %c8_i32_2 = arith.constant 8 : i32
    %7 = arith.muli %c0_i32_1, %c8_i32_2 : i32
    %8 = tpu.assume_multiple %7, 8 : i32
    %9 = arith.index_cast %8 : i32 to index
    %c0 = arith.constant 0 : index
    %10 = vector.load %arg2[%9, %c0] : memref<8x256xf32, #tpu.memory_space<vmem>>, vector<8x256xf32>
    %11 = arith.index_cast %8 : i32 to index
    %c0_3 = arith.constant 0 : index
    %12 = vector.load %arg3[%11, %c0_3] : memref<8x256xf32, #tpu.memory_space<vmem>>, vector<8x256xf32>
    %13 = arith.subf %10, %12 : vector<8x256xf32>
    %14 = arith.addi %5, %8 : i32
    %15 = tpu.assume_multiple %14, 8 : i32
    %16 = arith.index_cast %15 : i32 to index
    %c0_4 = arith.constant 0 : index
    %17 = vector.load %arg4[%16, %c0_4] : memref<8x1xf32, #tpu.memory_space<vmem>>, vector<8x1xf32>
    %18 = vector.broadcast %17 : vector<8x1xf32> to vector<8x256xf32>
    %19 = arith.mulf %13, %18 : vector<8x256xf32>
    %20 = arith.mulf %19, %19 : vector<8x256xf32>
    %21 = arith.addf %6, %20 : vector<8x256xf32>
    %c1_i32_5 = arith.constant 1 : i32
    %c0_6 = arith.constant 0 : index
    %c0_7 = arith.constant 0 : index
    %22 = vector.load %arg6[%c0_6, %c0_7] : memref<8x256xf32, #tpu.memory_space<vmem>>, vector<8x256xf32>
    %23 = arith.addf %22, %21 : vector<8x256xf32>
    %c0_8 = arith.constant 0 : index
    %c0_9 = arith.constant 0 : index
    %24 = vector.load %arg6[%c0_8, %c0_9] : memref<8x256xf32, #tpu.memory_space<vmem>>, vector<8x256xf32>
    tpu.vector_store %arg6[%c0_8, %c0_9], %23 {strides = array<i32>} : memref<8x256xf32, #tpu.memory_space<vmem>>, vector<8x256xf32>,
    %c0_i32_10 = arith.constant 0 : i32
    %25 = arith.cmpi eq, %arg1, %c0_i32_10 : i32
    %26 = arith.extui %25 : i1 to i32
    %c0_i32_11 = arith.constant 0 : i32
    %27 = arith.cmpi ne, %26, %c0_i32_11 : i32
    scf.if %27 {
      %c0_12 = arith.constant 0 : index
      %c0_13 = arith.constant 0 : index
      %28 = vector.load %arg6[%c0_12, %c0_13] : memref<8x256xf32, #tpu.memory_space<vmem>>, vector<8x256xf32>
      %cst_14 = arith.constant dense<0.000000e+00> : vector<8xf32>
      %29 = vector.multi_reduction <add>, %28, %cst_14 [1] : vector<8x256xf32> to vector<8xf32>
      %30 = vector.shape_cast %29 : vector<8xf32> to vector<8x1xf32>
      %cst_15 = arith.constant 4.8828125E-4 : f32
      %31 = vector.broadcast %cst_15 : f32 to vector<8x1xf32>
      %32 = arith.mulf %30, %31 : vector<8x1xf32>
      %c0_16 = arith.constant 0 : index
      %c0_17 = arith.constant 0 : index
      %c0_18 = arith.constant 0 : index
      %33 = vector.load %arg5[%c0_16, %c0_17, %c0_18] : memref<1x8x1xf32, #tpu.memory_space<vmem>>, vector<1x8x1xf32>
      %34 = vector.shape_cast %33 : vector<1x8x1xf32> to vector<8x1xf32>
      %35 = vector.shape_cast %32 : vector<8x1xf32> to vector<1x8x1xf32>
      tpu.vector_store %arg5[%c0_16, %c0_17, %c0_18], %35 {strides = array<i32>} : memref<1x8x1xf32, #tpu.memory_space<vmem>>, vector<1x8x1xf32>,
    } else {
    }
    return
  }
  func.func @transform_0(%arg0: i32, %arg1: i32) -> (i32, i32) {
    %c1_i32 = arith.constant 1 : i32
    %0 = arith.muli %arg0, %c1_i32 : i32
    %1 = arith.addi %0, %arg1 : i32
    %c0_i32 = arith.constant 0 : i32
    %c0_i32_0 = arith.constant 0 : i32
    return %1, %c0_i32 : i32, i32
  }
  func.func @transform_1(%arg0: i32, %arg1: i32) -> (i32, i32) {
    %c1_i32 = arith.constant 1 : i32
    %0 = arith.muli %arg0, %c1_i32 : i32
    %1 = arith.addi %0, %arg1 : i32
    %c0_i32 = arith.constant 0 : i32
    %c0_i32_0 = arith.constant 0 : i32
    return %1, %c0_i32 : i32, i32
  }
  func.func @transform_2(%arg0: i32, %arg1: i32) -> (i32, i32) {
    %c0_i32 = arith.constant 0 : i32
    %c0_i32_0 = arith.constant 0 : i32
    %c0_i32_1 = arith.constant 0 : i32
    return %c0_i32, %c0_i32_0 : i32, i32
  }
  func.func @transform_3(%arg0: i32, %arg1: i32) -> (i32, i32, i32) {
    %c0_i32 = arith.constant 0 : i32
    %c0_i32_0 = arith.constant 0 : i32
    %c0_i32_1 = arith.constant 0 : i32
    return %arg0, %c0_i32, %c0_i32_0 : i32, i32, i32
  }
}

</mosaic_0001>

<bundles_post_ra>
// kernel: tpu_custom_call.1
= control target key start
LH: loop header
LB: loop body
LE: loop exit
PB: predicated region body
PF: predicated region fallthrough
CT: control target
= control target key end

     0   :  { %8 = vsyncpa [#allocation4], 0  ;;  %s199_s0 = inlined_call_operand.hbm [shape: f32[8,256], index: 0, kind: input, shape index: {}]   ;;  %s200_s1 = inlined_call_operand.hbm [shape: f32[8,256], index: 1, kind: input, shape index: {}]   ;;  %s201_s2 = inlined_call_operand.vmem [shape: f32[8,1], index: 2, kind: input, shape index: {}]   ;;  %s202_s3 = inlined_call_operand.vmem [shape: f32[1,8,1], index: 3, kind: output, shape index: {}]  }
   0x1   :  { %s19_s14 = sshll.u32 %s199_s0, 4  ;;  %s20_s14 = int_to_ptr.hbm [resolvable:$true] %s19_s14 }
   0x2   :  { %9 = vsyncpa [#allocation6], 0  ;;  %s164_s15 = smov [#allocation3]   ;;  %s34_s19 = sshll.u32 %s200_s1, 4  ;;  %s35_s19 = int_to_ptr.hbm [resolvable:$true] %s34_s19 }
   0x3   :  { %s21_s16 = sshll.u32 %s164_s15, 4  ;;  %s165_s20 = smov [#allocation5]   ;;  %s22_s16 = int_to_ptr.vmem [resolvable:$true] %s21_s16 }
   0x4   :  { %24 = dma.hbm_to_vmem [thread:$0]  %s20_s14, 256, %s22_s16, [#allocation4]  }
   0x5   :  { %s36_s21 = sshll.u32 %s165_s20, 4  ;;  %s37_s21 = int_to_ptr.vmem [resolvable:$true] %s36_s21 }
   0x6   :  { %39 = dma.hbm_to_vmem [thread:$0]  %s35_s19, 256, %s37_s21, [#allocation6]  }
   0x7   :  { %160 = dma.done.wait [#allocation4], 256  }
   0x8   :  { %161 = vsyncadd [#allocation4], 4294967040 }
   0x9   :  { %162 = dma.done.wait [#allocation6], 256  }
   0xa   :  { %163 = vsyncadd [#allocation6], 4294967040  ;;  %v166_v0 = vmov 0   ;;  %v73_v1 = vld [vmem:[%s201_s2] sm:$0xff]  ;;  %v64_v3 = vld [vmem:[#allocation3 + $0x8] sm:$0xff]  ;;  %vm100_vm0 = vcmask 7168  }
   0xb   :  { %111 = vset.pattern.permute.xlu0 %v166_v0  ;;  %v63_v2 = vld [vmem:[#allocation3] sm:$0xff]  ;;  %v67_v4 = vld [vmem:[#allocation5] sm:$0xff]  ;;  %v68_v5 = vld [vmem:[#allocation5 + $0x8] sm:$0xff] }
   0xc   :  { %76 = vperm.xlu0 %111, %v73_v1   ;;  %v69_v6 = vsub.f32 %v63_v2, %v67_v4  ;;  %v70_v7 = vsub.f32 %v64_v3, %v68_v5 }
  0x7e   :  { %v77_v8 = vpop.permute.xlu0 %76 }
  0x7f   :  { %v79_v9 = vmul.f32 %v77_v8, %v69_v6  ;;  %v80_v10 = vmul.f32 %v77_v8, %v70_v7 }
  0x81   :  { %v81_v11 = vmul.f32 %v79_v9, %v79_v9  ;;  %v82_v12 = vmul.f32 %v80_v10, %v80_v10 }
  0x83   :  { %v96_v13 = vadd.f32 %v82_v12, %v81_v11 }
  0x85   :  { %97 = vadd.xlane.f32.xlu0 %v96_v13 }
  0xf8   :  { %v98_v14 = vpop.xlane.xlu0 %97 }
  0xf9   :  { %v99_v15 = vmul.f32 0.00048828125, %v98_v14 }
  0xfb   :  { %101 = vst.msk [vmem:[%s202_s3] sm:$0xff] %vm100_vm0, %v99_v15 }
  0xfc   :  { %106 = vsyncpa [#allocation4], 1 }
  0xfd   :  { %107 = vsyncpa [#allocation6], 1 }

</bundles_post_ra>
